<compile_context>
chip_gen: v7x
topology: tpu7x:2x2x1
jax: 0.10.0
libtpu: 0.0.40
codegen_flags: <defaults>
</compile_context>

<pallas_src>
import jax
import jax.numpy as jnp
from jax.experimental import pallas as pl
from jax.experimental.pallas import tpu as pltpu


def _ssd_loss_kernel(loc_p_ref, loc_t_ref, cls_p_ref, cls_t_ref, out_ref):
    f32 = jnp.float32

    cls_t = cls_t_ref[0]                                  # (1, A) int32
    pos = cls_t > 0                                       # (1, A) bool
    pos_f = pos.astype(f32)                               # (1, A)
    num_pos = jnp.sum(pos_f)                              # scalar

    # ---- SmoothL1 on positive anchors (sum reduction) -----------------------
    diff = loc_p_ref[0] - loc_t_ref[0]                    # (4, A)
    ad = jnp.abs(diff)
    sl1 = jnp.where(ad < 1.0, 0.5 * diff * diff, ad - 0.5)
    loc_loss = jnp.sum(sl1 * pos_f)                       # pos_f bcast (1,A)->(4,A)

    # ---- per-anchor cross entropy (classes on the sublane axis) -------------
    logits = cls_p_ref[0]                                 # (C, A)
    m = jnp.max(logits, axis=0, keepdims=True)            # (1, A)
    lse = jnp.log(jnp.sum(jnp.exp(logits - m), axis=0, keepdims=True)) + m
    tgt = jnp.maximum(cls_t, 0)                           # clamp(min=0)
    cls_iota = jax.lax.broadcasted_iota(jnp.int32, logits.shape, 0)   # (C, A)
    tgt_logit = jnp.sum(jnp.where(cls_iota == tgt, logits, 0.0),
                        axis=0, keepdims=True)            # (1, A)
    ce = jnp.maximum(lse - tgt_logit, 0.0)                # >= 0 (radix-select guard)
    ce = jnp.where(cls_t < 0, 0.0, ce)                    # ignored anchors -> 0

    cls_pos_loss = jnp.sum(ce * pos_f)

    # ---- hard-negative mining ------------------------------------------------
    # w = ce on negative anchors, 0 on positives (== -v of the reference).
    # neg = k anchors with largest w; their summed ce is reconstructed from the
    # k-th largest value t (exact radix select on the f32 bit pattern).
    w = ce * (1.0 - pos_f)                                # (1, A), all >= 0
    A = w.shape[-1]
    k = jnp.minimum(3.0 * num_pos, f32(A))                # scalar (f32)

    wb = pltpu.bitcast(w, jnp.int32)                      # >= 0, monotone with w

    def radix_step(_, carry):
        prefix, kk, high_mask, bit = carry
        in_group = (wb & high_mask) == prefix             # bits above `bit` match
        has_bit = (wb & bit) != 0
        c1 = jnp.sum(jnp.where(in_group & has_bit, 1.0, 0.0))   # f32 count
        take = c1 >= kk
        prefix = jnp.where(take, prefix | bit, prefix)
        kk = jnp.where(take, kk, kk - c1)
        high_mask = high_mask | bit
        bit = jnp.right_shift(bit, 1)
        return prefix, kk, high_mask, bit

    init = (jnp.int32(0), k, jnp.int32(0), jnp.int32(1 << 30))
    prefix, _, _, _ = jax.lax.fori_loop(0, 31, radix_step, init)

    t = jnp.max(jnp.where(wb == prefix, w, f32(-1.0)))    # k-th largest value
    gt = w > t
    c_gt = jnp.sum(jnp.where(gt, 1.0, 0.0))
    s_gt = jnp.sum(jnp.where(gt, w, 0.0))
    neg_loss = s_gt + (k - c_gt) * t
    neg_loss = jnp.where(num_pos > 0.0, neg_loss, 0.0)    # no positives -> no mining

    # ---- pack per-image partials into one lane-dense 128-wide row -----------
    lane = jax.lax.broadcasted_iota(jnp.int32, out_ref.shape, 2)
    out_ref[...] = (jnp.where(lane == 0, loc_loss, 0.0)
                    + jnp.where(lane == 1, cls_pos_loss + neg_loss, 0.0)
                    + jnp.where(lane == 2, num_pos, 0.0))


def ssd_loss(loc_preds, loc_targets, cls_preds, cls_targets):
    """num_classes == cls_preds.shape[-1]; returns a scalar float32 loss."""
    N, A, _ = loc_preds.shape
    C = cls_preds.shape[-1]

    # Lane-dense layouts: anchor axis A goes to the 128-lane (minor) dimension.
    loc_p = jnp.transpose(loc_preds, (0, 2, 1))           # (N, 4, A)
    loc_t = jnp.transpose(loc_targets, (0, 2, 1))         # (N, 4, A)
    cls_p = jnp.transpose(cls_preds, (0, 2, 1))           # (N, C, A)
    cls_t = cls_targets.astype(jnp.int32).reshape(N, 1, A)

    partial = pl.pallas_call(
        _ssd_loss_kernel,
        out_shape=jax.ShapeDtypeStruct((N, 1, 128), jnp.float32),
        grid_spec=pltpu.PrefetchScalarGridSpec(
            num_scalar_prefetch=0,
            grid=(N,),
            in_specs=[
                pl.BlockSpec((1, 4, A), lambda i: (i, 0, 0)),
                pl.BlockSpec((1, 4, A), lambda i: (i, 0, 0)),
                pl.BlockSpec((1, C, A), lambda i: (i, 0, 0)),
                pl.BlockSpec((1, 1, A), lambda i: (i, 0, 0)),
            ],
            out_specs=pl.BlockSpec((1, 1, 128), lambda i: (i, 0, 0)),
        ),
        compiler_params=pltpu.CompilerParams(
            dimension_semantics=("parallel",),
        ),
    )(loc_p, loc_t, cls_p, cls_t)

    loc_loss = jnp.sum(partial[:, 0, 0])
    cls_loss = jnp.sum(partial[:, 0, 1])
    num_pos = jnp.sum(partial[:, 0, 2])
    denom = jnp.where(num_pos > 0.0, num_pos, 1.0)
    # TODO(synk): the PyTorch module's host-side print of per-term losses is a
    # side effect and is intentionally omitted.
    return (loc_loss + cls_loss) / denom


def ssd_loss_ref(loc_preds, loc_targets, cls_preds, cls_targets):
    """Independent pure-JAX reference mirroring the PyTorch module."""
    pos = cls_targets > 0
    pos_f = pos.astype(jnp.float32)
    num_pos = jnp.sum(pos_f)

    diff = loc_preds - loc_targets
    ad = jnp.abs(diff)
    sl1 = jnp.where(ad < 1.0, 0.5 * diff * diff, ad - 0.5)
    loc_loss = jnp.sum(sl1 * pos_f[:, :, None])

    tgt = jnp.maximum(cls_targets, 0)
    lse = jax.scipy.special.logsumexp(cls_preds, axis=-1)
    tgt_logit = jnp.take_along_axis(cls_preds, tgt[..., None], axis=-1)[..., 0]
    ce = lse - tgt_logit
    ce = jnp.where(cls_targets < 0, 0.0, ce)

    v = ce * (pos_f - 1.0)
    idx = jnp.argsort(v, axis=1)
    rank = jnp.argsort(idx, axis=1)
    num_neg = 3 * jnp.sum(pos, axis=1, keepdims=True)
    neg = rank < num_neg

    selected = pos | neg
    cls_loss = jnp.sum(jnp.where(selected, ce, 0.0))
    denom = jnp.where(num_pos > 0.0, num_pos, 1.0)
    return (loc_loss + cls_loss) / denom


if __name__ == "__main__":
    # Small deterministic example: N=2 images, A=256 anchors, C=8 classes.
    N, A, C = 2, 256, 8
    key = jax.random.PRNGKey(0)
    k1, k2, k3, k4, k5 = jax.random.split(key, 5)

    loc_preds = jax.random.normal(k1, (N, A, 4), dtype=jnp.float32)
    loc_targets = jax.random.normal(k2, (N, A, 4), dtype=jnp.float32)
    cls_preds = jax.random.normal(k3, (N, A, C), dtype=jnp.float32)

    # ~10% positive anchors (classes 1..C-1), ~10% ignored (-1), rest background.
    labels = jax.random.randint(k4, (N, A), 1, C)
    r = jax.random.uniform(k5, (N, A))
    cls_targets = jnp.where(r < 0.10, labels,
                            jnp.where(r < 0.20, -1, 0)).astype(jnp.int32)

    loss = jax.jit(ssd_loss)(loc_preds, loc_targets, cls_preds, cls_targets)
    jax.block_until_ready(loss)

    ref = ssd_loss_ref(loc_preds, loc_targets, cls_preds, cls_targets)
    assert abs(float(loss) - float(ref)) <= 1e-3 * max(1.0, abs(float(ref))), (
        float(loss), float(ref))

    print("KERNEL_OK")
</pallas_src>

<mosaic_0001>
module attributes {stable_mosaic.version = 11 : i64} {
  func.func @_ssd_loss_kernel(%arg0: i32, %arg1: memref<1x4x256xf32, #tpu.memory_space<vmem>>, %arg2: memref<1x4x256xf32, #tpu.memory_space<vmem>>, %arg3: memref<1x8x256xf32, #tpu.memory_space<vmem>>, %arg4: memref<1x1x256xi32, #tpu.memory_space<vmem>>, %arg5: memref<1x1x128xf32, #tpu.memory_space<vmem>>) attributes {dimension_semantics = [#tpu.dimension_semantics<parallel>], iteration_bounds = array<i64: 2>, scalar_prefetch = 0 : i64, scratch_operands = 0 : i64, tpu.core_type = #tpu.core_type<tc>, window_params = [{transform_indices = @transform_0, window_bounds = array<i64: 1, 4, 256>}, {transform_indices = @transform_1, window_bounds = array<i64: 1, 4, 256>}, {transform_indices = @transform_2, window_bounds = array<i64: 1, 8, 256>}, {transform_indices = @transform_3, window_bounds = array<i64: 1, 1, 256>}, {transform_indices = @transform_4, window_bounds = array<i64: 1, 1, 128>}]} {
    %c0 = arith.constant 0 : index
    %c0_0 = arith.constant 0 : index
    %c0_1 = arith.constant 0 : index
    %0 = vector.load %arg4[%c0, %c0_0, %c0_1] : memref<1x1x256xi32, #tpu.memory_space<vmem>>, vector<1x1x256xi32>
    %1 = vector.shape_cast %0 : vector<1x1x256xi32> to vector<1x256xi32>
    %c0_i32 = arith.constant 0 : i32
    %2 = vector.broadcast %c0_i32 : i32 to vector<1x256xi32>
    %3 = arith.cmpi sgt, %1, %2 : vector<1x256xi32>
    %4 = arith.extui %3 : vector<1x256xi1> to vector<1x256xi32>
    %5 = arith.sitofp %4 : vector<1x256xi32> to vector<1x256xf32>
    %6 = vector.shape_cast %5 : vector<1x256xf32> to vector<1x1x256xf32>
    %cst = arith.constant dense<0.000000e+00> : vector<1xf32>
    %7 = vector.multi_reduction <add>, %6, %cst [1, 2] : vector<1x1x256xf32> to vector<1xf32>
    %8 = vector.shape_cast %7 : vector<1xf32> to vector<1x1x1xf32>
    %9 = vector.extract %8[0, 0, 0] : f32 from vector<1x1x1xf32>
    %c0_2 = arith.constant 0 : index
    %c0_3 = arith.constant 0 : index
    %c0_4 = arith.constant 0 : index
    %10 = vector.load %arg1[%c0_2, %c0_3, %c0_4] : memref<1x4x256xf32, #tpu.memory_space<vmem>>, vector<1x4x256xf32>
    %11 = vector.shape_cast %10 : vector<1x4x256xf32> to vector<4x256xf32>
    %c0_5 = arith.constant 0 : index
    %c0_6 = arith.constant 0 : index
    %c0_7 = arith.constant 0 : index
    %12 = vector.load %arg2[%c0_5, %c0_6, %c0_7] : memref<1x4x256xf32, #tpu.memory_space<vmem>>, vector<1x4x256xf32>
    %13 = vector.shape_cast %12 : vector<1x4x256xf32> to vector<4x256xf32>
    %14 = arith.subf %11, %13 : vector<4x256xf32>
    %15 = math.absf %14 : vector<4x256xf32>
    %cst_8 = arith.constant 1.000000e+00 : f32
    %16 = vector.broadcast %cst_8 : f32 to vector<4x256xf32>
    %17 = arith.cmpf olt, %15, %16 : vector<4x256xf32>
    %cst_9 = arith.constant 5.000000e-01 : f32
    %18 = vector.broadcast %cst_9 : f32 to vector<4x256xf32>
    %19 = arith.mulf %18, %14 : vector<4x256xf32>
    %20 = arith.mulf %19, %14 : vector<4x256xf32>
    %cst_10 = arith.constant 5.000000e-01 : f32
    %21 = vector.broadcast %cst_10 : f32 to vector<4x256xf32>
    %22 = arith.subf %15, %21 : vector<4x256xf32>
    %23 = arith.select %17, %20, %22 : vector<4x256xi1>, vector<4x256xf32>
    %24 = vector.broadcast %5 : vector<1x256xf32> to vector<4x256xf32>
    %25 = arith.mulf %23, %24 : vector<4x256xf32>
    %26 = vector.shape_cast %25 : vector<4x256xf32> to vector<1x4x256xf32>
    %cst_11 = arith.constant dense<0.000000e+00> : vector<1xf32>
    %27 = vector.multi_reduction <add>, %26, %cst_11 [1, 2] : vector<1x4x256xf32> to vector<1xf32>
    %28 = vector.shape_cast %27 : vector<1xf32> to vector<1x1x1xf32>
    %29 = vector.extract %28[0, 0, 0] : f32 from vector<1x1x1xf32>
    %c0_12 = arith.constant 0 : index
    %c0_13 = arith.constant 0 : index
    %c0_14 = arith.constant 0 : index
    %30 = vector.load %arg3[%c0_12, %c0_13, %c0_14] : memref<1x8x256xf32, #tpu.memory_space<vmem>>, vector<1x8x256xf32>
    %31 = vector.shape_cast %30 : vector<1x8x256xf32> to vector<8x256xf32>
    %cst_15 = arith.constant dense<0xFF800000> : vector<256xf32>
    %32 = vector.multi_reduction <maximumf>, %31, %cst_15 [0] : vector<8x256xf32> to vector<256xf32>
    %33 = vector.shape_cast %32 : vector<256xf32> to vector<1x256xf32>
    %34 = vector.broadcast %33 : vector<1x256xf32> to vector<8x256xf32>
    %35 = arith.subf %31, %34 : vector<8x256xf32>
    %36 = math.exp %35 : vector<8x256xf32>
    %cst_16 = arith.constant dense<0.000000e+00> : vector<256xf32>
    %37 = vector.multi_reduction <add>, %36, %cst_16 [0] : vector<8x256xf32> to vector<256xf32>
    %38 = vector.shape_cast %37 : vector<256xf32> to vector<1x256xf32>
    %39 = math.log %38 : vector<1x256xf32>
    %40 = arith.addf %39, %33 : vector<1x256xf32>
    %c0_i32_17 = arith.constant 0 : i32
    %41 = vector.broadcast %c0_i32_17 : i32 to vector<1x256xi32>
    %42 = arith.maxsi %1, %41 : vector<1x256xi32>
    %43 = tpu.iota {dimensions = array<i32: 0>} : vector<8x256xi32>
    %44 = vector.broadcast %42 : vector<1x256xi32> to vector<8x256xi32>
    %45 = arith.cmpi eq, %43, %44 : vector<8x256xi32>
    %cst_18 = arith.constant 0.000000e+00 : f32
    %46 = vector.broadcast %cst_18 : f32 to vector<8x256xf32>
    %47 = arith.select %45, %31, %46 : vector<8x256xi1>, vector<8x256xf32>
    %cst_19 = arith.constant dense<0.000000e+00> : vector<256xf32>
    %48 = vector.multi_reduction <add>, %47, %cst_19 [0] : vector<8x256xf32> to vector<256xf32>
    %49 = vector.shape_cast %48 : vector<256xf32> to vector<1x256xf32>
    %50 = arith.subf %40, %49 : vector<1x256xf32>
    %cst_20 = arith.constant 0.000000e+00 : f32
    %51 = vector.broadcast %cst_20 : f32 to vector<1x256xf32>
    %52 = arith.maximumf %50, %51 : vector<1x256xf32>
    %c0_i32_21 = arith.constant 0 : i32
    %53 = vector.broadcast %c0_i32_21 : i32 to vector<1x256xi32>
    %54 = arith.cmpi slt, %1, %53 : vector<1x256xi32>
    %cst_22 = arith.constant 0.000000e+00 : f32
    %55 = vector.broadcast %cst_22 : f32 to vector<1x256xf32>
    %56 = arith.select %54, %55, %52 : vector<1x256xi1>, vector<1x256xf32>
    %57 = arith.mulf %56, %5 : vector<1x256xf32>
    %58 = vector.shape_cast %57 : vector<1x256xf32> to vector<1x1x256xf32>
    %cst_23 = arith.constant dense<0.000000e+00> : vector<1xf32>
    %59 = vector.multi_reduction <add>, %58, %cst_23 [1, 2] : vector<1x1x256xf32> to vector<1xf32>
    %60 = vector.shape_cast %59 : vector<1xf32> to vector<1x1x1xf32>
    %61 = vector.extract %60[0, 0, 0] : f32 from vector<1x1x1xf32>
    %cst_24 = arith.constant 1.000000e+00 : f32
    %62 = vector.broadcast %cst_24 : f32 to vector<1x256xf32>
    %63 = arith.subf %62, %5 : vector<1x256xf32>
    %64 = arith.mulf %56, %63 : vector<1x256xf32>
    %cst_25 = arith.constant 3.000000e+00 : f32
    %65 = arith.mulf %cst_25, %9 : f32
    %cst_26 = arith.constant 2.560000e+02 : f32
    %66 = arith.minimumf %65, %cst_26 : f32
    %67 = tpu.bitcast %64 : vector<1x256xf32> -> vector<1x256xi32>
    %c0_i32_27 = arith.constant 0 : i32
    %c0_i32_28 = arith.constant 0 : i32
    %c1073741824_i32 = arith.constant 1073741824 : i32
    %c0_i32_29 = arith.constant 0 : i32
    %c31_i32 = arith.constant 31 : i32
    %68 = arith.addi %c0_i32_29, %c31_i32 : i32
    %c1_i32 = arith.constant 1 : i32
    %69:4 = scf.for %arg6 = %c0_i32_29 to %68 step %c1_i32 iter_args(%arg7 = %c0_i32_27, %arg8 = %66, %arg9 = %c0_i32_28, %arg10 = %c1073741824_i32) -> (i32, f32, i32, i32)  : i32 {
      %118 = vector.broadcast %arg9 : i32 to vector<1x256xi32>
      %119 = arith.andi %67, %118 : vector<1x256xi32>
      %120 = vector.broadcast %arg7 : i32 to vector<1x256xi32>
      %121 = arith.cmpi eq, %119, %120 : vector<1x256xi32>
      %122 = vector.broadcast %arg10 : i32 to vector<1x256xi32>
      %123 = arith.andi %67, %122 : vector<1x256xi32>
      %c0_i32_47 = arith.constant 0 : i32
      %124 = vector.broadcast %c0_i32_47 : i32 to vector<1x256xi32>
      %125 = arith.cmpi ne, %123, %124 : vector<1x256xi32>
      %126 = arith.andi %121, %125 : vector<1x256xi1>
      %cst_48 = arith.constant 1.000000e+00 : f32
      %cst_49 = arith.constant 0.000000e+00 : f32
      %127 = vector.broadcast %cst_48 : f32 to vector<1x256xf32>
      %128 = vector.broadcast %cst_49 : f32 to vector<1x256xf32>
      %129 = arith.select %126, %127, %128 : vector<1x256xi1>, vector<1x256xf32>
      %130 = vector.shape_cast %129 : vector<1x256xf32> to vector<1x1x256xf32>
      %cst_50 = arith.constant dense<0.000000e+00> : vector<1xf32>
      %131 = vector.multi_reduction <add>, %130, %cst_50 [1, 2] : vector<1x1x256xf32> to vector<1xf32>
      %132 = vector.shape_cast %131 : vector<1xf32> to vector<1x1x1xf32>
      %133 = vector.extract %132[0, 0, 0] : f32 from vector<1x1x1xf32>
      %134 = arith.cmpf oge, %133, %arg8 : f32
      %135 = arith.ori %arg7, %arg10 : i32
      %136 = arith.select %134, %135, %arg7 : i32
      %137 = arith.subf %arg8, %133 : f32
      %138 = arith.select %134, %arg8, %137 : f32
      %139 = arith.ori %arg9, %arg10 : i32
      %c1_i32_51 = arith.constant 1 : i32
      %140 = arith.shrsi %arg10, %c1_i32_51 : i32
      scf.yield %136, %138, %139, %140 : i32, f32, i32, i32
    }
    %70 = vector.broadcast %69#0 : i32 to vector<1x256xi32>
    %71 = arith.cmpi eq, %67, %70 : vector<1x256xi32>
    %cst_30 = arith.constant -1.000000e+00 : f32
    %72 = vector.broadcast %cst_30 : f32 to vector<1x256xf32>
    %73 = arith.select %71, %64, %72 : vector<1x256xi1>, vector<1x256xf32>
    %74 = vector.shape_cast %73 : vector<1x256xf32> to vector<1x1x256xf32>
    %cst_31 = arith.constant dense<0xFF800000> : vector<1xf32>
    %75 = vector.multi_reduction <maximumf>, %74, %cst_31 [1, 2] : vector<1x1x256xf32> to vector<1xf32>
    %76 = vector.shape_cast %75 : vector<1xf32> to vector<1x1x1xf32>
    %77 = vector.extract %76[0, 0, 0] : f32 from vector<1x1x1xf32>
    %78 = vector.broadcast %77 : f32 to vector<1x256xf32>
    %79 = arith.cmpf ogt, %64, %78 : vector<1x256xf32>
    %cst_32 = arith.constant 1.000000e+00 : f32
    %cst_33 = arith.constant 0.000000e+00 : f32
    %80 = vector.broadcast %cst_32 : f32 to vector<1x256xf32>
    %81 = vector.broadcast %cst_33 : f32 to vector<1x256xf32>
    %82 = arith.select %79, %80, %81 : vector<1x256xi1>, vector<1x256xf32>
    %83 = vector.shape_cast %82 : vector<1x256xf32> to vector<1x1x256xf32>
    %cst_34 = arith.constant dense<0.000000e+00> : vector<1xf32>
    %84 = vector.multi_reduction <add>, %83, %cst_34 [1, 2] : vector<1x1x256xf32> to vector<1xf32>
    %85 = vector.shape_cast %84 : vector<1xf32> to vector<1x1x1xf32>
    %86 = vector.extract %85[0, 0, 0] : f32 from vector<1x1x1xf32>
    %cst_35 = arith.constant 0.000000e+00 : f32
    %87 = vector.broadcast %cst_35 : f32 to vector<1x256xf32>
    %88 = arith.select %79, %64, %87 : vector<1x256xi1>, vector<1x256xf32>
    %89 = vector.shape_cast %88 : vector<1x256xf32> to vector<1x1x256xf32>
    %cst_36 = arith.constant dense<0.000000e+00> : vector<1xf32>
    %90 = vector.multi_reduction <add>, %89, %cst_36 [1, 2] : vector<1x1x256xf32> to vector<1xf32>
    %91 = vector.shape_cast %90 : vector<1xf32> to vector<1x1x1xf32>
    %92 = vector.extract %91[0, 0, 0] : f32 from vector<1x1x1xf32>
    %93 = arith.subf %66, %86 : f32
    %94 = arith.mulf %93, %77 : f32
    %95 = arith.addf %92, %94 : f32
    %cst_37 = arith.constant 0.000000e+00 : f32
    %96 = arith.cmpf ogt, %9, %cst_37 : f32
    %cst_38 = arith.constant 0.000000e+00 : f32
    %97 = arith.select %96, %95, %cst_38 : f32
    %98 = tpu.iota {dimensions = array<i32: 2>} : vector<1x1x128xi32>
    %c0_i32_39 = arith.constant 0 : i32
    %99 = vector.broadcast %c0_i32_39 : i32 to vector<1x1x128xi32>
    %100 = arith.cmpi eq, %98, %99 : vector<1x1x128xi32>
    %cst_40 = arith.constant 0.000000e+00 : f32
    %101 = vector.broadcast %29 : f32 to vector<1x1x128xf32>
    %102 = vector.broadcast %cst_40 : f32 to vector<1x1x128xf32>
    %103 = arith.select %100, %101, %102 : vector<1x1x128xi1>, vector<1x1x128xf32>
    %c1_i32_41 = arith.constant 1 : i32
    %104 = vector.broadcast %c1_i32_41 : i32 to vector<1x1x128xi32>
    %105 = arith.cmpi eq, %98, %104 : vector<1x1x128xi32>
    %106 = arith.addf %61, %97 : f32
    %cst_42 = arith.constant 0.000000e+00 : f32
    %107 = vector.broadcast %106 : f32 to vector<1x1x128xf32>
    %108 = vector.broadcast %cst_42 : f32 to vector<1x1x128xf32>
    %109 = arith.select %105, %107, %108 : vector<1x1x128xi1>, vector<1x1x128xf32>
    %110 = arith.addf %103, %109 : vector<1x1x128xf32>
    %c2_i32 = arith.constant 2 : i32
    %111 = vector.broadcast %c2_i32 : i32 to vector<1x1x128xi32>
    %112 = arith.cmpi eq, %98, %111 : vector<1x1x128xi32>
    %cst_43 = arith.constant 0.000000e+00 : f32
    %113 = vector.broadcast %9 : f32 to vector<1x1x128xf32>
    %114 = vector.broadcast %cst_43 : f32 to vector<1x1x128xf32>
    %115 = arith.select %112, %113, %114 : vector<1x1x128xi1>, vector<1x1x128xf32>
    %116 = arith.addf %110, %115 : vector<1x1x128xf32>
    %c0_44 = arith.constant 0 : index
    %c0_45 = arith.constant 0 : index
    %c0_46 = arith.constant 0 : index
    %117 = vector.load %arg5[%c0_44, %c0_45, %c0_46] : memref<1x1x128xf32, #tpu.memory_space<vmem>>, vector<1x1x128xf32>
    tpu.vector_store %arg5[%c0_44, %c0_45, %c0_46], %116 {strides = array<i32>} : memref<1x1x128xf32, #tpu.memory_space<vmem>>, vector<1x1x128xf32>,
    return
  }
  func.func @transform_0(%arg0: i32) -> (i32, i32, i32) {
    %c0_i32 = arith.constant 0 : i32
    %c0_i32_0 = arith.constant 0 : i32
    %c0_i32_1 = arith.constant 0 : i32
    return %arg0, %c0_i32, %c0_i32_0 : i32, i32, i32
  }
  func.func @transform_1(%arg0: i32) -> (i32, i32, i32) {
    %c0_i32 = arith.constant 0 : i32
    %c0_i32_0 = arith.constant 0 : i32
    %c0_i32_1 = arith.constant 0 : i32
    return %arg0, %c0_i32, %c0_i32_0 : i32, i32, i32
  }
  func.func @transform_2(%arg0: i32) -> (i32, i32, i32) {
    %c0_i32 = arith.constant 0 : i32
    %c0_i32_0 = arith.constant 0 : i32
    %c0_i32_1 = arith.constant 0 : i32
    return %arg0, %c0_i32, %c0_i32_0 : i32, i32, i32
  }
  func.func @transform_3(%arg0: i32) -> (i32, i32, i32) {
    %c0_i32 = arith.constant 0 : i32
    %c0_i32_0 = arith.constant 0 : i32
    %c0_i32_1 = arith.constant 0 : i32
    return %arg0, %c0_i32, %c0_i32_0 : i32, i32, i32
  }
  func.func @transform_4(%arg0: i32) -> (i32, i32, i32) {
    %c0_i32 = arith.constant 0 : i32
    %c0_i32_0 = arith.constant 0 : i32
    %c0_i32_1 = arith.constant 0 : i32
    return %arg0, %c0_i32, %c0_i32_0 : i32, i32, i32
  }
}

</mosaic_0001>

<bundles_post_ra>
// kernel: ssd_loss.1
= control target key start
LH: loop header
LB: loop body
LE: loop exit
PB: predicated region body
PF: predicated region fallthrough
CT: control target
= control target key end

     0   :  { %9 = vsyncpa [#allocation3], 0  ;;  %s1337_s0 = inlined_call_operand.vmem [shape: f32[2,4,256], index: 0, kind: input, shape index: {}]   ;;  %s1338_s1 = inlined_call_operand.hbm [shape: f32[2,4,256], index: 1, kind: input, shape index: {}]   ;;  %s1339_s2 = inlined_call_operand.hbm [shape: f32[2,8,256], index: 2, kind: input, shape index: {}]   ;;  %s1340_s3 = inlined_call_operand.vmem [shape: s32[2,1,256], index: 3, kind: input, shape index: {}]   ;;  %s1341_s4 = inlined_call_operand.vmem [shape: f32[2,1,128], index: 4, kind: output, shape index: {}]  }
   0x1   :  { %11 = vsyncpa [#allocation3 + $0x1], 0 }
   0x2   :  { %12 = vsyncpa [#allocation5], 0 }
   0x3   :  { %14 = vsyncpa [#allocation5 + $0x1], 0  ;;  %s1029_s15 = smov 0   ;;  %s1031_s16 = smov 0  }
   0x4   :  { %s1033_s17 = smov 0   ;;  %s1035_s18 = smov 0  }
   0x5 LB: > { %s1048_s19 = sadd.s32 4294967295, %s976_s18   ;;  %s1051_s20 = sadd.s32 1, %s976_s18   ;;  %s976_s18 = sphi %s1035_s18, %s1358_s18   ;;  %s972_s17 = sphi %s1033_s17, %s1357_s17   ;;  %s968_s16 = sphi %s1031_s16, %s1356_s16   ;;  %s964_s15 = sphi %s1029_s15, %s1355_s15  }
   0x6   : > { %s50_s21 = ssub.s32 %s976_s18, %s1051_s20  ;;  %s53_s22 = sadd.s32 1, %s972_s17 }
   0x7   : > { %p51_p0 = scmp.eq.s32.totalorder %s50_s21, 0  ;;  %p60_p1 = scmp.ne.s32.totalorder %s972_s17, %s968_s16 }
   0x8   : > { %p61_p2 = scmp.eq.s32.totalorder %s976_s18, 0  ;;  %p66_p3 = scmp.ne.s32.totalorder %s968_s16, %s964_s15 }
   0x9   : > { %s1061_s23 = scalar_select %p51_p0, %s972_s17, %s53_s22  }
   0xa   : > { %p62_p4 = por %p61_p2, %p60_p1  ;;  %p67_p5 = scmp.eq.s32.totalorder %s1048_s19, 0 }
   0xb   : > { %p773_p6 = scmp.lt.s32.totalorder %s976_s18, 2  ;;  %s1070_s25 = sand.u32 1, %s972_s17  }
   0xc   : > { %p1065_p7 = por %p67_p5, %p66_p3  ;;  %s729_s26 = sshll.u32 %s1070_s25, 3 }
   0xd   : > { %s745_s27 = sshll.u32 %s976_s18, 7  ;;  %s180_s5 = scalar_lea.vmem [#allocation2], %s729_s26 }
   0xe   : > { %s1343_s24 = scalar_select %p1065_p7, 1, 0 }
   0xf   : > { %s1077_s30 = scalar_lea.hbm %s1338_s1, %s745_s27  ;;  %s188_s6 = sshll.u32 %s180_s5, 4  ;;  %s1079_s6 = int_to_ptr.vmem [resolvable:$true] %s188_s6 }
  0x10   : > { %p1081_p8 = pnand %p773_p6, %p62_p4  ;;  %s177_s8 = scalar_lea.sflag [#allocation3], %s1070_s25 }
  0x11   : > { %s858_s9 = scalar_lea.hbm %s1077_s30, 128  ;;  %s863_s12 = scalar_lea.hbm %s1338_s1, 256 }
  0x12   : > { %p859_p11 = scmp.ne.s32.totalorder %s1077_s30, %s858_s9  ;;  %p860_p12 = pneg %p1081_p8 }
  0x13   : > { %p864_p1 = scmp.lt.u32.totalorder %s1077_s30, %s1338_s1  ;;  %p865_p2 = scmp.lt.u32.totalorder %s863_s12, %s858_s9 }
  0x14   : > { %p861_p13 = pnand %p860_p12, %p859_p11  ;;  %p867_p4 = scmp.lt.u32.totalorder %s858_s9, %s1077_s30 }
  0x15   : > { %p866_p3 = por %p865_p2, %p864_p1 }
  0x16   : > { %p862_p0 = pneg %p861_p13 }
  0x17   : > { %p868_p5 = por %p867_p4, %p866_p3 }
  0x19   : > { %p869_p6 = pnand %p868_p5, %p862_p0 }
  0x1b   : > { %872 = shalt.err (!%p869_p6)
}
  0x1c   : > { %s873_s15 = scalar_lea.vmem %s1079_s6, 128  ;;  %s998_s21 = smov [#allocation2]  }
  0x1d   : > { %p874_p11 = scmp.ne.s32.totalorder %s1079_s6, %s873_s15  ;;  %s878_s22 = sshll.u32 %s998_s21, 4  ;;  %s879_s22 = int_to_ptr.vmem [resolvable:$false] %s878_s22 }
  0x1e   : > { %s880_s26 = scalar_lea.vmem %s879_s22, 256  ;;  %p881_p10 = scmp.lt.s32.totalorder %s1079_s6, %s879_s22 }
  0x1f   : > { %p876_p13 = pnand %p874_p11, %p860_p12  ;;  %p882_p1 = scmp.lt.s32.totalorder %s880_s26, %s873_s15 }
  0x21   : > { %p877_p9 = pneg %p876_p13  ;;  %p883_p2 = por %p882_p1, %p881_p10 }
  0x23   : > { %p884_p3 = pnand %p883_p2, %p877_p9 }
  0x25   : > { %887 = shalt.err (!%p884_p3)
}
  0x26   : > { %769 = dma.hbm_to_vmem [thread:$0]  (!%p1081_p8), %s1077_s30, 128, %s1079_s6, %s177_s8  }
  0x27   : > { %p1345_p0 = scmp.lt.s32.totalorder %s976_s18, 3  ;;  %p1346_p4 = scmp.ge.s32.totalorder %s976_s18, 1 }
  0x28   : > { %s732_s28 = sshll.u32 %s1070_s25, 4  ;;  %s746_s29 = sshll.u32 %s976_s18, 8 }
  0x29   : > { %p1117_p5 = pnand %p1346_p4, %p1345_p0  ;;  %s1126_s10 = scalar_lea.hbm %s1339_s2, %s746_s29 }
  0x2a   : > { %s199_s11 = scalar_lea.vmem [#allocation4], %s732_s28  ;;  %s196_s30 = scalar_lea.sflag [#allocation5], %s1070_s25 }
  0x2b   : > { %s1347_s27 = scalar_select %p1117_p5, 1, 0 }
  0x2c   : > { %s207_s12 = sshll.u32 %s199_s11, 4  ;;  %s888_s6 = scalar_lea.hbm %s1126_s10, 256  ;;  %s208_s12 = int_to_ptr.vmem [resolvable:$true] %s207_s12 }
  0x2d   : > { %p889_p9 = scmp.ne.s32.totalorder %s1126_s10, %s888_s6  ;;  %s893_s13 = scalar_lea.hbm %s1339_s2, 512 }
  0x2e   : > { %p894_p11 = scmp.lt.u32.totalorder %s1126_s10, %s1339_s2  ;;  %p895_p13 = scmp.lt.u32.totalorder %s893_s13, %s888_s6 }
  0x2f   : > { %p891_p10 = pnand %p889_p9, %p860_p12  ;;  %p897_p2 = scmp.lt.u32.totalorder %s888_s6, %s1126_s10 }
  0x30   : > { %p896_p1 = por %p895_p13, %p894_p11 }
  0x31   : > { %p892_p6 = pneg %p891_p10 }
  0x32   : > { %p898_p3 = por %p897_p2, %p896_p1 }
  0x34   : > { %p899_p0 = pnand %p898_p3, %p892_p6 }
  0x36   : > { %902 = shalt.err (!%p899_p0)
}
  0x37   : > { %s903_s25 = scalar_lea.vmem %s208_s12, 256  ;;  %s999_s21 = smov [#allocation4]  }
  0x38   : > { %p904_p4 = scmp.ne.s32.totalorder %s208_s12, %s903_s25  ;;  %s908_s22 = sshll.u32 %s999_s21, 4  ;;  %s909_s22 = int_to_ptr.vmem [resolvable:$false] %s908_s22 }
  0x39   : > { %s910_s26 = scalar_lea.vmem %s909_s22, 512  ;;  %p911_p7 = scmp.lt.s32.totalorder %s208_s12, %s909_s22 }
  0x3a   : > { %p906_p9 = pnand %p904_p4, %p860_p12  ;;  %p912_p5 = scmp.lt.s32.totalorder %s910_s26, %s903_s25 }
  0x3c   : > { %p907_p10 = pneg %p906_p9  ;;  %p913_p11 = por %p912_p5, %p911_p7 }
  0x3e   : > { %p914_p13 = pnand %p913_p11, %p907_p10 }
  0x40   : > { %917 = shalt.err (!%p914_p13)
}
  0x41   : > { %772 = dma.hbm_to_vmem [thread:$0]  (!%p1081_p8), %s1126_s10, 256, %s208_s12, %s196_s30  }
  0x42   : > { %p1348_p6 = scmp.ne.s32.totalorder %s1347_s27, 0 }
  0x43   : > { %s225_s28 = sand.u32 (!%p1348_p6), 1, %s968_s16   ;;  %p1349_p12 = scmp.ne.s32.totalorder (!%p1348_p6), %s1343_s24, 0 }
  0x44   : > { %223 = sbr.rel (%p1348_p6) target bundleno = 1013 (0x3f5), region = 36  ;;  %s736_s29 = sshll.u32 (!%p1348_p6), %s225_s28, 3 }
  0x45   : > { %s226_s5 = scalar_lea.sflag (!%p1348_p6), [#allocation3], %s225_s28  ;;  %s229_s9 = scalar_lea.vmem (!%p1348_p6), [#allocation2], %s736_s29 }
  0x4b   : > { %955 = dma.done.wait (%p1349_p12), %s226_s5, 128  }
  0x4c   : > { %957 = vsyncadd (%p1349_p12), %s226_s5, 4294967168  ;;  %s737_s11 = sshll.u32 %s225_s28, 4  ;;  %s235_s6 = scalar_lea.sflag [#allocation5], %s225_s28 }
  0x4d   : > { %s238_s7 = scalar_lea.vmem [#allocation4], %s737_s11 }
  0x4e   : > { %959 = dma.done.wait (%p1349_p12), %s235_s6, 256  }
  0x4f   : > { %961 = vsyncadd (%p1349_p12), %s235_s6, 4294967040  ;;  %p275_p7 = scmp.lt.s32.totalorder %s1048_s19, 1  ;;  %v292_v0 = vlaneseq  ;;  %v343_v4 = vld [vmem:[%s238_s7] sm:$0xff]  ;;  %v344_v5 = vld [vmem:[%s238_s7 + $0x8] sm:$0xff]  ;;  %v1000_v11 = vmov 0.0   ;;  %vm302_vm1 = vcmask 1040384  }
  0x50   : > { %v345_v7 = vrot.slane %v343_v4, 4  ;;  %v351_v8 = vrot.slane %v344_v5, 4  ;;  %v316_v10 = vld [vmem:[%s229_s9] sm:$0xff]  ;;  %vm330_vm3 = vcmask 1043456   ;;  %s1002_s26 = smov 256.0   ;;  %s1232_s9 = smov 1073741824  }
  0x51   : > { %s1360_s19 = smov (!%p275_p7, %s1048_s19), 1  ;;  %v1164_v1 = vshrl.u32 %v292_v0, 7  ;;  %s1234_s11 = smov 0  }
  0x52   : > { %s740_s27 = sshll.u32 %s1360_s19, 1  ;;  %s286_s30 = scalar_lea.vmem %s1341_s4, %s1360_s19  ;;  %v346_v16 = vmax.f32 %v343_v4, %v345_v7  ;;  %v352_v17 = vmax.f32 %v344_v5, %v351_v8 }
  0x53   : > { %s283_s8 = scalar_lea.vmem %s1340_s3, %s740_s27  ;;  %s747_s13 = sshll.u32 %s1360_s19, 3  ;;  %v1181_v3 = vsub.s32 0, %v1164_v1  ;;  %v1185_v6 = vsub.s32 1, %v1164_v1 }
  0x54   : > { %s279_s25 = scalar_lea.vmem %s1337_s0, %s747_s13  ;;  %v1178_v2 = vld [vmem:[%s283_s8] sm:$0x3]  ;;  %v347_v22 = vrot.slane %v346_v16, 2  ;;  %v353_v28 = vrot.slane %v352_v17, 2  ;;  %s1239_s7 = smov 0  }
  0x55   : > { %vm288_vm0 = vcmp.gt.s32.totalorder %v1178_v2, 0  ;;  %v315_v9 = vld [vmem:[%s279_s25] sm:$0xff]  ;;  %vm413_vm6 = vcmp.lt.s32.totalorder %v1178_v2, 0  ;;  %s1241_s27 = smov 0  }
  0x56   : > { %v1190_v12 = vsel %vm288_vm0, 1.0, %v1000_v11  ;;  %v317_v13 = vsub.f32 %v315_v9, %v316_v10  ;;  %v348_v27 = vmax.f32 %v346_v16, %v347_v22  ;;  %v354_v32 = vmax.f32 %v352_v17, %v353_v28 }
  0x57   : > { %v295_v14 = vrot.slane %v1190_v12, %v1181_v3  ;;  %v299_v15 = vrot.slane %v1190_v12, %v1185_v6  ;;  %v382_v44 = vsel %vm288_vm0, %v1178_v2, 0 }
  0x58   : > { %v318_v18 = vand.u32 2147483647, %v317_v13  ;;  %v320_v19 = vmul.f32 0.5, %v317_v13  ;;  %v349_v31 = vrot.slane %v348_v27, 1  ;;  %v355_v36 = vrot.slane %v354_v32, 1 }
  0x59   : > { %v303_v20 = vsel %vm302_vm1, %v295_v14, 0.0  ;;  %v304_v21 = vsel %vm302_vm1, %v299_v15, 0.0  ;;  %v324_v24 = vcombine.low %v295_v14, %v299_v15  ;;  %v388_v45 = vrot.slane %v382_v44, %v1181_v3 }
  0x5a   : > { %v305_v23 = vadd.f32 %v304_v21, %v303_v20  ;;  %vm319_vm2 = vcmp.lt.f32.partialorder %v318_v18, 1.0  ;;  %v321_v25 = vmul.f32 %v320_v19, %v317_v13  ;;  %v742_v26 = vadd.f32 -0.5, %v318_v18 }
  0x5b   : > { %v350_v35 = vmax.f32 %v348_v27, %v349_v31  ;;  %v356_v39 = vmax.f32 %v354_v32, %v355_v36  ;;  %v392_v46 = vrot.slane %v382_v44, %v1185_v6  ;;  %vm393_vm4 = vcmp.eq.s32.totalorder %v1164_v1, %v388_v45 }
  0x5c   : > { %306 = vadd.xlane.f32.xlu0 %v305_v23  ;;  %v323_v29 = vsel %vm319_vm2, %v321_v25, %v742_v26  ;;  %v395_v48 = vsel %vm393_vm4, %v343_v4, 0.0  ;;  %v1001_v19 = vmov 1966171168  }
  0x5d   : > { %v326_v30 = vmul.f32 %v324_v24, %v323_v29  ;;  %v357_v40 = vsub.f32 %v343_v4, %v350_v35  ;;  %v358_v41 = vsub.f32 %v344_v5, %v356_v39  ;;  %vm394_vm5 = vcmp.eq.s32.totalorder %v1164_v1, %v392_v46 }
  0x5e   : > { %v396_v51 = vsel %vm394_vm5, %v344_v5, 0.0  ;;  %v397_v54 = vrot.slane %v395_v48, 4  ;;  %v418_v20 = vunpack.c.l.s4 %v1001_v19 }
  0x5f   : > { %v328_v33 = vcombine.high %v326_v30, %v326_v30  ;;  %v331_v34 = vsel %vm330_vm3, %v326_v30, 0.0  ;;  %v359_v42 = vmul.f32 1.442695, %v357_v40  ;;  %v361_v43 = vmul.f32 1.442695, %v358_v41 }
  0x60   : > { %v403_v57 = vrot.slane %v396_v51, 4  ;;  %v398_v60 = vadd.f32 %v397_v54, %v395_v48  ;;  %v419_v27 = vunpack.c.0.s8 %v418_v20 }
  0x61   : > { %v332_v37 = vsel %vm330_vm3, %v328_v33, 0.0  ;;  %850 = vpow2.f32 %v359_v42 }
  0x62   : > { %v333_v38 = vadd.f32 %v332_v37, %v331_v34  ;;  %852 = vpow2.f32 %v361_v43  ;;  %v404_v63 = vadd.f32 %v403_v57, %v396_v51  ;;  %v399_v9 = vrot.slane %v398_v60, 2 }
  0x63   : > { %v422_v31 = vsub.s32 %v419_v27, %v1164_v1  ;;  %v457_v34 = vsub.f32 1.0, %v1190_v12 }
  0x64   : > { %334 = vadd.xlane.f32.xlu0 %v333_v38  ;;  %v405_v4 = vrot.slane %v404_v63, 2  ;;  %v400_v5 = vadd.f32 %v399_v9, %v398_v60 }
  0x66   : > { %v406_v13 = vadd.f32 %v405_v4, %v404_v63  ;;  %v401_v14 = vrot.slane %v400_v5, 1 }
  0x68   : > { %v407_v15 = vrot.slane %v406_v13, 1  ;;  %v402_v18 = vadd.f32 %v401_v14, %v400_v5 }
  0x6a   : > { %v408_v24 = vadd.f32 %v407_v15, %v406_v13 }
  0x6b   : > { %v851_v47 = vpop.eup %850 }
  0x6c   : > { %v363_v49 = vrot.slane %v851_v47, 4  ;;  %v853_v50 = vpop.eup %852 }
  0x6d   : > { %v369_v53 = vrot.slane %v853_v50, 4 }
  0x6e   : > { %v364_v52 = vadd.f32 %v851_v47, %v363_v49 }
  0x6f   : > { %v370_v56 = vadd.f32 %v853_v50, %v369_v53 }
  0x70   : > { %v365_v55 = vrot.slane %v364_v52, 2 }
  0x71   : > { %v371_v59 = vrot.slane %v370_v56, 2 }
  0x72   : > { %v366_v58 = vadd.f32 %v365_v55, %v364_v52 }
  0x73   : > { %v372_v62 = vadd.f32 %v371_v59, %v370_v56 }
  0x74   : > { %v367_v61 = vrot.slane %v366_v58, 1 }
  0x75   : > { %v373_v8 = vrot.slane %v372_v62, 1 }
  0x76   : > { %v368_v7 = vadd.f32 %v367_v61, %v366_v58 }
  0x77   : > { %v374_v10 = vadd.f32 %v373_v8, %v372_v62 }
  0x78   : > { %854 = vlog2.f32 %v368_v7 }
  0x79   : > { %856 = vlog2.f32 %v374_v10 }
  0x82   : > { %v855_v16 = vpop.eup %854 }
  0x83   : > { %v376_v17 = vmul.f32 0.6931472, %v855_v16  ;;  %v857_v21 = vpop.eup %856 }
  0x84   : > { %v378_v22 = vmul.f32 0.6931472, %v857_v21 }
  0x85   : > { %v379_v23 = vadd.f32 %v376_v17, %v350_v35 }
  0x86   : > { %v380_v25 = vadd.f32 %v378_v22, %v356_v39 }
  0x87   : > { %v409_v26 = vsub.f32 %v379_v23, %v402_v18 }
  0x88   : > { %v410_v28 = vsub.f32 %v380_v25, %v408_v24 }
  0x89   : > { %v411_v29 = vmax.f32 %v409_v26, 0.0 }
  0x8a   : > { %v412_v30 = vmax.f32 %v410_v28, 0.0 }
  0x8c   : > { %v416_v32 = vcombine.low %v411_v29, %v412_v30 }
  0x8e   : > { %v423_v33 = vrot.slane %v416_v32, %v422_v31 }
  0x90   : > { %v430_v36 = vrot.slane %v423_v33, %v422_v31 }
  0x92   : > { %v432_v37 = vsel %vm413_vm6, 0.0, %v430_v36 }
  0x93   : > { %v433_v38 = vmul.f32 %v1190_v12, %v432_v37  ;;  %v1209_v35 = vmul.f32 %v457_v34, %v432_v37 }
  0x95   : > { %v438_v39 = vrot.slane %v433_v38, %v1181_v3  ;;  %v442_v40 = vrot.slane %v433_v38, %v1185_v6  ;;  %v1215_v41 = vrot.slane %v1209_v35, %v1181_v3  ;;  %v1219_v1 = vrot.slane %v1209_v35, %v1185_v6 }
  0x97   : > { %v445_v2 = vsel %vm302_vm1, %v438_v39, 0.0  ;;  %v446_v42 = vsel %vm302_vm1, %v442_v40, 0.0 }
  0x98   : > { %v447_v43 = vadd.f32 %v446_v42, %v445_v2 }
  0x9a   : > { %448 = vadd.xlane.f32.xlu1 %v447_v43 }
  0xe9   : > { %v307_v12 = vpop.xlane.xlu0 %306 }
  0xea   : > { %v308_v44 = vrot.slane %v307_v12, 4 }
  0xec   : > { %v309_v45 = vadd.f32 %v308_v44, %v307_v12 }
  0xee   : > { %v310_v46 = vrot.slane %v309_v45, 2 }
  0xf0   : > { %v311_v47 = vadd.f32 %v310_v46, %v309_v45 }
  0xf1   : > { %v335_v48 = vpop.xlane.xlu0 %334 }
  0xf2   : > { %v312_v49 = vrot.slane %v311_v47, 1  ;;  %v336_v50 = vrot.slane %v335_v48, 4 }
  0xf4   : > { %v313_v51 = vadd.f32 %v312_v49, %v311_v47  ;;  %v337_v52 = vadd.f32 %v336_v50, %v335_v48 }
  0xf6   : > { %748 = vpush %v313_v51  ;;  %v338_v53 = vrot.slane %v337_v52, 2 }
  0xf8   : > { %v339_v54 = vadd.f32 %v338_v53, %v337_v52 }
  0xfa   : > { %v340_v55 = vrot.slane %v339_v54, 1 }
  0xfc   : > { %v341_v56 = vadd.f32 %v340_v55, %v339_v54 }
  0xfe   : > { %750 = vpush %v341_v56 }
 0x127   : > { %s1223_s21 = spop %748  ;;  %v449_v57 = vpop.xlane.xlu1 %448 }
 0x128   : > { %s459_s22 = smul.f32 3.0, %s1223_s21  ;;  %v450_v58 = vrot.slane %v449_v57, 4 }
 0x12a   : > { %s1226_s28 = smin.f32 %s1002_s26, %s459_s22   ;;  %v451_v59 = vadd.f32 %v450_v58, %v449_v57 }
 0x12b   : > { %s1350_s6 = smov %s1226_s28 }
 0x12c   : > { %v452_v60 = vrot.slane %v451_v59, 2 }
 0x12e   : > { %v453_v61 = vadd.f32 %v452_v60, %v451_v59 }
 0x12f   : > { %s1228_s29 = spop %750 }
 0x130   : > { %v454_v62 = vrot.slane %v453_v61, 1 }
 0x132   : > { %v455_v63 = vadd.f32 %v454_v62, %v453_v61 }
 0x134   : > { %752 = vpush %v455_v63 }
 0x165   : > { %s1230_s5 = spop %752 }
 0x166 LB: >> { %v480_v7 = vstv %s984_s11  ;;  %v483_v8 = vstv %s992_s7  ;;  %v486_v9 = vstv %s980_s9  ;;  %s512_s10 = sor.u32 %s980_s9, %s984_s11   ;;  %s513_s12 = sshra.s32 %s980_s9, 1   ;;  %v1003_v14 = vmov 0.0   ;;  %s996_s27 = sphi %s1241_s27, %s475_s27   ;;  %s992_s7 = sphi %s1239_s7, %s1354_s7   ;;  %s988_s6 = sphi %s1350_s6, %s1364_s6   ;;  %s984_s11 = sphi %s1234_s11, %s1353_s11   ;;  %s980_s9 = sphi %s1232_s9, %s1352_s9  }
 0x167   : >> { %v481_v10 = vand.u32 %v480_v7, %v1215_v41  ;;  %v482_v4 = vand.u32 %v480_v7, %v1219_v1  ;;  %v487_v5 = vand.u32 %v486_v9, %v1215_v41  ;;  %v488_v13 = vand.u32 %v486_v9, %v1219_v1  ;;  %s508_s24 = sor.u32 %s980_s9, %s992_s7  ;;  %s475_s27 = sadd.s32 1, %s996_s27  }
 0x168   : >> { %p472_p5 = scmp.ge.s32.totalorder %s475_s27, 31   ;;  %s1352_s9 = smov %s513_s12 }
 0x169   : >> { %vm484_vm7 = vcmp.eq.s32.totalorder %v481_v10, %v483_v8  ;;  %vm485_vm8 = vcmp.eq.s32.totalorder %v482_v4, %v483_v8  ;;  %vm489_vm9 = vcmp.ne.s32.totalorder %v487_v5, 0  ;;  %vm490_vm10 = vcmp.ne.s32.totalorder %v488_v13, 0  ;;  %s1353_s11 = smov %s512_s10  ;;  %p586_p1 = scmp.gt.f32.partialorder (%p472_p5), %s1223_s21, 0.0 }
 0x16a   : >> { %vm491_vm11 = vmand %vm484_vm7, %vm489_vm9  ;;  %v589_v61 = vand.u32 (%p472_p5), 127, %v292_v0  ;;  %v591_v62 = vstv (%p472_p5), %s1228_s29  ;;  %v599_v63 = vstv (%p472_p5), %s1223_s21 }
 0x16b   : >> { %vm492_vm12 = vmand %vm485_vm8, %vm490_vm10  ;;  %v493_v15 = vsel %vm491_vm11, 1.0, %v1003_v14 }
 0x16c   : >> { %v494_v16 = vsel %vm492_vm12, 1.0, %v1003_v14  ;;  %v495_v17 = vsel %vm302_vm1, %v493_v15, 0.0  ;;  %vm590_vm0 = vcmp.eq.s32.totalorder (%p472_p5), %v589_v61, 0  ;;  %vm598_vm2 = vcmp.eq.s32.totalorder (%p472_p5), %v589_v61, 2 }
 0x16d   : >> { %v496_v18 = vsel %vm302_vm1, %v494_v16, 0.0  ;;  %v592_v7 = vsel (%p472_p5), %vm590_vm0, %v591_v62, 0.0  ;;  %v600_v10 = vsel (%p472_p5), %vm598_vm2, %v599_v63, 0.0 }
 0x16e   : >> { %v497_v19 = vadd.f32 %v496_v18, %v495_v17 }
 0x170   : >> { %498 = vadd.xlane.f32.xlu0 %v497_v19 }
 0x1fd   : >> { %v499_v20 = vpop.xlane.xlu0 %498 }
 0x1fe   : >> { %v500_v21 = vrot.slane %v499_v20, 4 }
 0x200   : >> { %v501_v22 = vadd.f32 %v500_v21, %v499_v20 }
 0x202   : >> { %v502_v23 = vrot.slane %v501_v22, 2 }
 0x204   : >> { %v503_v24 = vadd.f32 %v502_v23, %v501_v22 }
 0x206   : >> { %v504_v25 = vrot.slane %v503_v24, 1 }
 0x208   : >> { %v505_v26 = vadd.f32 %v504_v25, %v503_v24 }
 0x20a   : >> { %754 = vpush %v505_v26 }
 0x239   : > { %474 = sbr.rel (!%p472_p5) target bundleno = 358 (0x166), region = 102 }
 0x23b   : >> { %s755_s18 = spop %754 }
 0x23c   : >> { %p507_p8 = scmp.ge.f32.partialorder %s755_s18, %s988_s6  ;;  %s510_s8 = ssub.f32 %s988_s6, %s755_s18 }
 0x23e   : >> { %s1362_s24 = smov (!%p507_p8, %s508_s24), %s992_s7  ;;  %s1364_s6 = smov (!%p507_p8, %s988_s6), %s510_s8 }
 0x23f   : >> { %s1354_s7 = smov %s1362_s24  ;;  %v514_v27 = vstv (%p472_p5), %s1362_s24 }
 0x240   : > { %vm515_vm13 = vcmp.eq.s32.totalorder %v1215_v41, %v514_v27  ;;  %vm516_vm14 = vcmp.eq.s32.totalorder %v1219_v1, %v514_v27 }
 0x241   : > { %v519_v28 = vsel %vm515_vm13, %v1215_v41, -1.0  ;;  %v520_v29 = vsel %vm516_vm14, %v1219_v1, -1.0 }
 0x242   : > { %v521_v30 = vsel %vm302_vm1, %v519_v28, -inf  ;;  %v522_v31 = vsel %vm302_vm1, %v520_v29, -inf }
 0x243   : > { %v523_v32 = vmax.f32 %v521_v30, %v522_v31 }
 0x245   : > { %524 = vmax.xlane.f32.xlu0 %v523_v32 }
 0x2d2   : > { %v525_v33 = vpop.xlane.xlu0 %524 }
 0x2d3   : > { %v526_v34 = vrot.slane %v525_v33, 4 }
 0x2d5   : > { %v527_v36 = vmax.f32 %v525_v33, %v526_v34 }
 0x2d7   : > { %v528_v37 = vrot.slane %v527_v36, 2 }
 0x2d9   : > { %v529_v38 = vmax.f32 %v527_v36, %v528_v37 }
 0x2db   : > { %v530_v39 = vrot.slane %v529_v38, 1 }
 0x2dd   : > { %v531_v40 = vmax.f32 %v529_v38, %v530_v39 }
 0x2df   : > { %756 = vpush %v531_v40 }
 0x310   : > { %s1298_s14 = spop %756 }
 0x311   : > { %v533_v41 = vstv %s1298_s14 }
 0x312   : > { %vm534_vm15 = vcmp.gt.f32.partialorder %v1209_v35, %v533_v41 }
 0x313   : > { %v535_v1 = vsel %vm534_vm15, 1.0, %v1000_v11  ;;  %v559_v2 = vsel %vm534_vm15, %v1209_v35, 0.0 }
 0x314   : > { %v564_v42 = vrot.slane %v559_v2, %v1181_v3  ;;  %v568_v43 = vrot.slane %v559_v2, %v1185_v6  ;;  %v540_v12 = vrot.slane %v535_v1, %v1181_v3  ;;  %v544_v44 = vrot.slane %v535_v1, %v1185_v6 }
 0x316   : > { %v571_v45 = vsel %vm302_vm1, %v564_v42, 0.0  ;;  %v572_v46 = vsel %vm302_vm1, %v568_v43, 0.0  ;;  %v547_v47 = vsel %vm302_vm1, %v540_v12, 0.0  ;;  %v548_v48 = vsel %vm302_vm1, %v544_v44, 0.0 }
 0x317   : > { %v573_v49 = vadd.f32 %v572_v46, %v571_v45  ;;  %v549_v11 = vadd.f32 %v548_v48, %v547_v47  ;;  %vm593_vm1 = vcmp.eq.s32.totalorder %v589_v61, 1 }
 0x319   : > { %574 = vadd.xlane.f32.xlu1 %v573_v49  ;;  %550 = vadd.xlane.f32.xlu0 %v549_v11 }
 0x3a6   : > { %v575_v35 = vpop.xlane.xlu1 %574  ;;  %v551_v50 = vpop.xlane.xlu0 %550 }
 0x3a7   : > { %v576_v51 = vrot.slane %v575_v35, 4  ;;  %v552_v3 = vrot.slane %v551_v50, 4 }
 0x3a9   : > { %v577_v6 = vadd.f32 %v576_v51, %v575_v35  ;;  %v553_v52 = vadd.f32 %v552_v3, %v551_v50 }
 0x3ab   : > { %v578_v53 = vrot.slane %v577_v6, 2  ;;  %v554_v54 = vrot.slane %v553_v52, 2 }
 0x3ad   : > { %v579_v55 = vadd.f32 %v578_v53, %v577_v6  ;;  %v555_v56 = vadd.f32 %v554_v54, %v553_v52 }
 0x3af   : > { %v556_v57 = vrot.slane %v555_v56, 1  ;;  %v580_v58 = vrot.slane %v579_v55, 1 }
 0x3b1   : > { %v557_v59 = vadd.f32 %v556_v57, %v555_v56  ;;  %v581_v60 = vadd.f32 %v580_v58, %v579_v55 }
 0x3b3   : > { %758 = vpush %v557_v59 }
 0x3b4   : > { %760 = vpush %v581_v60 }
 0x3e4   : > { %s759_s15 = spop %758 }
 0x3e5   : > { %s583_s25 = ssub.f32 %s1226_s28, %s759_s15  ;;  %s761_s26 = spop %760 }
 0x3e7   : > { %s584_s22 = smul.f32 %s1298_s14, %s583_s25 }
 0x3e9   : > { %s585_s9 = sadd.f32 %s761_s26, %s584_s22 }
 0x3eb   : > { %s1366_s9 = smov (!%p586_p1, %s585_s9), 0.0 }
 0x3ec   : > { %s594_s11 = sadd.f32 %s1230_s5, %s1366_s9 }
 0x3ee   : > { %v595_v8 = vstv %s594_s11 }
 0x3ef   : > { %v596_v9 = vsel %vm593_vm1, %v595_v8, 0.0 }
 0x3f0   : > { %v597_v4 = vadd.f32 %v596_v9, %v592_v7 }
 0x3f2   : > { %v601_v5 = vadd.f32 %v600_v10, %v597_v4 }
 0x3f4   : > { %602 = vst [vmem:[%s286_s30] sm:$0x1] %v601_v5 }
 0x3f5 PF: > { %p17_p2 = scmp.ge.s32.totalorder %s1051_s20, 4   ;;  %s1355_s15 = smov %s968_s16 }
 0x3f6   : > { %s1356_s16 = smov %s972_s17  ;;  %s1357_s17 = smov %s1061_s23 }
 0x3f7   : > { %s1358_s18 = smov %s1051_s20  ;;  %19 = sbr.rel (!%p17_p2) target bundleno = 5 (0x5), region = 113 }
 0x3fe   :  { %620 = vsyncpa [#allocation3], 1 }
 0x3ff   :  { %622 = vsyncpa [#allocation3 + $0x1], 1 }
 0x400   :  { %623 = vsyncpa [#allocation5], 1 }
 0x401   :  { %625 = vsyncpa [#allocation5 + $0x1], 1 }

</bundles_post_ra>
